<compile_context>
chip_gen: v5e
topology: v5e:2x2
jax: 0.10.0
libtpu: 0.0.40
codegen_flags: <defaults>
</compile_context>

<pallas_src>
import functools

import jax
import jax.numpy as jnp
from jax.experimental import pallas as pl
from jax.experimental.pallas import tpu as pltpu


def _mha_map_kernel(q_ref, k_ref, wq_ref, bq_ref, wk_ref, bk_ref, *rest,
                    num_heads, has_bias, compute_dtype):
    if has_bias:
        bias_ref, out_ref, kp_ref = rest
    else:
        out_ref, kp_ref = rest

    E, HWp = kp_ref.shape
    c = E // num_heads
    tq = q_ref.shape[1]

    # ---- k projection (1x1 conv): computed once per batch element into a
    # persistent VMEM scratch.  Grid axis 1 (q tiles) is "arbitrary", so the
    # scratch stays valid across q tiles on each core.
    @pl.when(pl.program_id(1) == 0)
    def _():
        kv = k_ref[0]                                               # (D, HWp)
        kp = jax.lax.dot_general(wk_ref[...], kv, (((1,), (0,)), ((), ())),
                                 preferred_element_type=jnp.float32)  # (E, HWp) f32
        kp_ref[...] = (kp + bk_ref[...]).astype(compute_dtype)

    # ---- q projection, transposed layout (E, tq) so the per-head split is a
    # sublane-aligned static slice.  normalize_fact is already folded into
    # wq/bq at trace time.
    qv = q_ref[0]                                                   # (tq, D)
    qp = jax.lax.dot_general(wq_ref[...], qv, (((1,), (1,)), ((), ())),
                             preferred_element_type=jnp.float32)    # (E, tq) f32
    qp = (qp + bq_ref[...]).astype(compute_dtype)                   # cast hoisted (once)
    kp = kp_ref[...]                                                # (E, HWp) compute_dtype

    if has_bias:
        nb = bias_ref[0]                                            # (1, HWp): 0 / -inf

    # ---- per-head scores; the head matmuls are independent back-to-back MXU
    # ops in one basic block, so Mosaic can pipeline them.
    s = []
    for n in range(num_heads):
        qn = qp[n * c:(n + 1) * c, :]                               # (c, tq)
        kn = kp[n * c:(n + 1) * c, :]                               # (c, HWp)
        sn = jax.lax.dot_general(qn, kn, (((0,), (0,)), ((), ())),
                                 preferred_element_type=jnp.float32)  # (tq, HWp)
        if has_bias:
            sn = sn + nb
        s.append(sn)

    # ---- softmax over (heads, HWp) jointly.  Global row max first, then a
    # single exp pass, then out_ref is written exactly once (no RMW rescale).
    m = jnp.max(s[0], axis=-1, keepdims=True)
    for n in range(1, num_heads):
        m = jnp.maximum(m, jnp.max(s[n], axis=-1, keepdims=True))   # (tq, 1)

    p = [jnp.exp(s[n] - m) for n in range(num_heads)]               # f32 exp tiles

    l = p[0].sum(axis=-1, keepdims=True)
    for n in range(1, num_heads):
        l = l + p[n].sum(axis=-1, keepdims=True)                    # (tq, 1)

    inv = pl.reciprocal(l, approx=True)                             # EUP slot
    inv = inv * (2.0 - l * inv)        # one Newton step -> f32-accurate denominator

    for n in range(num_heads):
        # n * HWp is a static multiple of 128 -> aligned, lane-dense stores.
        out_ref[0, :, pl.ds(n * HWp, HWp)] = (p[n] * inv).astype(out_ref.dtype)


def _default_max_q_tile():
    # v5e's MXU is 128x128 -> tq=128; v6e/v7x MXUs are 256-wide -> tq=256.
    try:
        kind = jax.devices()[0].device_kind.lower()
    except Exception:
        return 128
    if "v5e" in kind or "v5 lite" in kind or "v5lite" in kind:
        return 128
    return 256


def mha_attention_map(q, k, wq, bq, wk, bk, num_heads, mask=None, *,
                      compute_dtype=jnp.bfloat16, out_dtype=jnp.bfloat16,
                      max_q_tile=None):
    """Pallas TPU implementation of MHAttentionMap.forward (dropout p=0.0 -> identity)."""
    # TODO(synk): nn.Dropout with p > 0 (random masking) is not implemented; module uses p=0.0.
    B, Qn, D = q.shape
    _, Dk, H, W = k.shape
    assert Dk == D
    E = wq.shape[0]
    assert E % num_heads == 0
    HW = H * W
    # Pad the spatial axis to a multiple of 128 so every per-head lane offset is
    # 128-aligned.  Pad columns receive a -inf bias, so exp == 0 there.
    HWp = ((HW + 127) // 128) * 128
    norm = float(E / num_heads) ** (-0.5)

    # Fold normalize_fact into the query projection at trace time; pre-cast all
    # weights / activations so no f32->compute_dtype casts run in-kernel.
    wq_s = (wq * norm).astype(compute_dtype)
    wk_c = wk.astype(compute_dtype)
    bq_s = (bq * norm).reshape(E, 1).astype(jnp.float32)
    bk_r = bk.reshape(E, 1).astype(jnp.float32)

    # Keep k channels-major: (B, D, H, W) -> (B, D, HW) is a free reshape.
    k3 = k.reshape(B, D, HW)
    if HWp != HW:
        k3 = jnp.pad(k3, ((0, 0), (0, 0), (0, HWp - HW)))
    q_in = q.astype(compute_dtype)
    k_in = k3.astype(compute_dtype)

    has_bias = (mask is not None) or (HWp != HW)
    if has_bias:
        if mask is not None:
            col_bias = jnp.where(mask.reshape(B, 1, HW), -jnp.inf, 0.0).astype(jnp.float32)
        else:
            col_bias = jnp.zeros((B, 1, HW), jnp.float32)
        if HWp != HW:
            col_bias = jnp.pad(col_bias, ((0, 0), (0, 0), (0, HWp - HW)),
                               constant_values=-jnp.inf)

    if max_q_tile is None:
        max_q_tile = _default_max_q_tile()
    tq = Qn if Qn <= max_q_tile else max_q_tile

    cd = jnp.dtype(compute_dtype).itemsize
    od = jnp.dtype(out_dtype).itemsize

    def vmem_estimate(t):
        est = 2 * t * D * cd                         # q block (double-buffered)
        est += 2 * D * HWp * cd                      # k block
        est += 2 * 2 * E * D * cd + 2 * 2 * E * 4    # weights + biases
        if has_bias:
            est += 2 * HWp * 4
        est += 2 * t * num_heads * HWp * od          # out block
        est += E * HWp * cd                          # persistent kp scratch
        est += 2 * num_heads * t * HWp * 4           # f32 score / exp temporaries
        est += 2 * E * max(t, 8) * 4                 # q projection temporaries
        return int(est * 1.25)                       # headroom for Mosaic internals

    try:
        phys_vmem = int(pltpu.get_tpu_info().vmem_capacity_bytes)
    except Exception:
        phys_vmem = 64 * 1024 * 1024                 # v7x per-core VMEM (smallest)
    if phys_vmem < (32 << 20):
        phys_vmem = 64 * 1024 * 1024
    vmem_cap = phys_vmem * 3 // 4                    # never request all of physical VMEM
    # TODO(synk): for very large feature maps (HW in the several thousands) add a third
    # grid axis tiling HWp flash-style instead of only shrinking the q tile.
    while vmem_estimate(tq) > vmem_cap and tq > 8:
        tq = max(8, (tq // 2) // 8 * 8)
    n_qt = pl.cdiv(Qn, tq)
    vmem_limit = int(min(max(vmem_estimate(tq), 16 * 1024 * 1024), vmem_cap))

    inputs = [q_in, k_in, wq_s, bq_s, wk_c, bk_r]
    in_specs = [
        pl.BlockSpec((1, tq, D), lambda b, t: (b, t, 0)),      # q
        pl.BlockSpec((1, D, HWp), lambda b, t: (b, 0, 0)),     # k (channels-major)
        pl.BlockSpec((E, D), lambda b, t: (0, 0)),             # q_linear.weight (scaled)
        pl.BlockSpec((E, 1), lambda b, t: (0, 0)),             # q_linear.bias (scaled)
        pl.BlockSpec((E, D), lambda b, t: (0, 0)),             # k_linear.weight
        pl.BlockSpec((E, 1), lambda b, t: (0, 0)),             # k_linear.bias
    ]
    if has_bias:
        inputs.append(col_bias)
        in_specs.append(pl.BlockSpec((1, 1, HWp), lambda b, t: (b, 0, 0)))

    kernel = functools.partial(_mha_map_kernel, num_heads=num_heads,
                               has_bias=has_bias, compute_dtype=compute_dtype)

    out_flat = pl.pallas_call(
        kernel,
        out_shape=jax.ShapeDtypeStruct((B, Qn, num_heads * HWp), out_dtype),
        grid_spec=pltpu.PrefetchScalarGridSpec(
            num_scalar_prefetch=0,
            grid=(B, n_qt),
            in_specs=in_specs,
            out_specs=pl.BlockSpec((1, tq, num_heads * HWp), lambda b, t: (b, t, 0)),
            scratch_shapes=[pltpu.VMEM((E, HWp), compute_dtype)],   # persistent kp
        ),
        compiler_params=pltpu.CompilerParams(
            # Batch axis "parallel" (megacore).  The q-tile axis must be
            # "arbitrary" because the kp scratch persists across it.
            dimension_semantics=("parallel", "arbitrary"),
            vmem_limit_bytes=vmem_limit),
    )(*inputs)

    if HWp != HW:
        out = out_flat.reshape(B, Qn, num_heads, HWp)[:, :, :, :HW]
        return out.reshape(B, Qn, num_heads, H, W)
    return out_flat.reshape(B, Qn, num_heads, H, W)


def _reference(q, k, wq, bq, wk, bk, num_heads, mask=None):
    """Pure-JAX reference mirroring the PyTorch forward."""
    B, Qn, D = q.shape
    E = wq.shape[0]
    c = E // num_heads
    H, W = k.shape[-2], k.shape[-1]
    norm = float(E / num_heads) ** (-0.5)
    qp = q @ wq.T + bq
    kp = jnp.einsum('ed,bdhw->behw', wk, k) + bk[None, :, None, None]
    qh = qp.reshape(B, Qn, num_heads, c)
    kh = kp.reshape(B, num_heads, c, H, W)
    w = jnp.einsum('bqnc,bnchw->bqnhw', qh * norm, kh)
    if mask is not None:
        w = jnp.where(mask[:, None, None, :, :], -jnp.inf, w)
    wf = jax.nn.softmax(w.reshape(B, Qn, -1), axis=-1)
    return wf.reshape(w.shape)


if __name__ == "__main__":
    # Small shapes consistent with the module.
    B, Q, query_dim, hidden_dim, num_heads, H, W = 2, 8, 32, 32, 4, 16, 16

    key = jax.random.PRNGKey(0)
    kq, kk, kwq, kwk, kk2 = jax.random.split(key, 5)

    # Deterministic parameter init (xavier_uniform weights, zero bias, like __init__).
    bound = (6.0 / (query_dim + hidden_dim)) ** 0.5
    wq = jax.random.uniform(kwq, (hidden_dim, query_dim), jnp.float32, -bound, bound)
    wk = jax.random.uniform(kwk, (hidden_dim, query_dim), jnp.float32, -bound, bound)
    bq = jnp.zeros((hidden_dim,), jnp.float32)
    bk = jnp.zeros((hidden_dim,), jnp.float32)

    q = jax.random.normal(kq, (B, Q, query_dim), jnp.float32)
    k = jax.random.normal(kk, (B, query_dim, H, W), jnp.float32)

    # Case 1: f32 compute/out, mask=None.
    out = mha_attention_map(q, k, wq, bq, wk, bk, num_heads, mask=None,
                            compute_dtype=jnp.float32, out_dtype=jnp.float32)
    out = jax.block_until_ready(out)
    ref = _reference(q, k, wq, bq, wk, bk, num_heads, mask=None)
    assert out.shape == (B, Q, num_heads, H, W)
    assert jnp.allclose(out, ref, atol=1e-3, rtol=1e-2)

    # Case 2: boolean padding mask (last 4 columns masked), f32.
    mask = jnp.zeros((B, H, W), bool).at[:, :, -4:].set(True)
    out_m = mha_attention_map(q, k, wq, bq, wk, bk, num_heads, mask=mask,
                              compute_dtype=jnp.float32, out_dtype=jnp.float32)
    out_m = jax.block_until_ready(out_m)
    ref_m = _reference(q, k, wq, bq, wk, bk, num_heads, mask=mask)
    assert jnp.allclose(out_m, ref_m, atol=1e-3, rtol=1e-2)
    # Masked positions must be exactly zero.
    assert jnp.all(out_m[:, :, :, :, -4:] == 0.0)

    # Case 3: production defaults (bf16 MXU inputs + bf16 output), looser tolerance.
    out_bf = mha_attention_map(q, k, wq, bq, wk, bk, num_heads, mask=None)
    out_bf = jax.block_until_ready(out_bf)
    assert jnp.allclose(out_bf.astype(jnp.float32), ref, atol=2e-2, rtol=1e-1)

    # Case 4: HW not a multiple of 128 (exercises the lane-padding path), with mask.
    H2 = W2 = 10
    k2 = jax.random.normal(kk2, (B, query_dim, H2, W2), jnp.float32)
    mask2 = jnp.zeros((B, H2, W2), bool).at[:, :, -3:].set(True)
    out2 = mha_attention_map(q, k2, wq, bq, wk, bk, num_heads, mask=mask2,
                             compute_dtype=jnp.float32, out_dtype=jnp.float32)
    out2 = jax.block_until_ready(out2)
    ref2 = _reference(q, k2, wq, bq, wk, bk, num_heads, mask=mask2)
    assert out2.shape == (B, Q, num_heads, H2, W2)
    assert jnp.allclose(out2, ref2, atol=1e-3, rtol=1e-2)
    assert jnp.all(out2[:, :, :, :, -3:] == 0.0)

    print("KERNEL_OK")
</pallas_src>

<mosaic_0001>
module attributes {stable_mosaic.version = 11 : i64} {
  func.func @_mha_map_kernel(%arg0: i32, %arg1: i32, %arg2: memref<1x8x32xf32, #tpu.memory_space<vmem>>, %arg3: memref<1x32x256xf32, #tpu.memory_space<vmem>>, %arg4: memref<32x32xf32, #tpu.memory_space<vmem>>, %arg5: memref<32x1xf32, #tpu.memory_space<vmem>>, %arg6: memref<32x32xf32, #tpu.memory_space<vmem>>, %arg7: memref<32x1xf32, #tpu.memory_space<vmem>>, %arg8: memref<1x8x1024xf32, #tpu.memory_space<vmem>>, %arg9: memref<32x256xf32, #tpu.memory_space<vmem>>) attributes {dimension_semantics = [#tpu.dimension_semantics<parallel>, #tpu.dimension_semantics<arbitrary>], iteration_bounds = array<i64: 2, 1>, scalar_prefetch = 0 : i64, scratch_operands = 1 : i64, tpu.core_type = #tpu.core_type<tc>, window_params = [{transform_indices = @transform_0, window_bounds = array<i64: 1, 8, 32>}, {transform_indices = @transform_1, window_bounds = array<i64: 1, 32, 256>}, {pipeline_mode = #tpu.pipeline_mode<synchronous>, transform_indices = @transform_2, window_bounds = array<i64: 32, 32>}, {pipeline_mode = #tpu.pipeline_mode<synchronous>, transform_indices = @transform_3, window_bounds = array<i64: 32, 1>}, {pipeline_mode = #tpu.pipeline_mode<synchronous>, transform_indices = @transform_4, window_bounds = array<i64: 32, 32>}, {pipeline_mode = #tpu.pipeline_mode<synchronous>, transform_indices = @transform_5, window_bounds = array<i64: 32, 1>}, {transform_indices = @transform_6, window_bounds = array<i64: 1, 8, 1024>}]} {
    %c0_i32 = arith.constant 0 : i32
    %0 = arith.cmpi eq, %arg1, %c0_i32 : i32
    %1 = arith.extui %0 : i1 to i32
    %c0_i32_0 = arith.constant 0 : i32
    %2 = arith.cmpi ne, %1, %c0_i32_0 : i32
    scf.if %2 {
      %c0_31 = arith.constant 0 : index
      %c0_32 = arith.constant 0 : index
      %c0_33 = arith.constant 0 : index
      %82 = vector.load %arg3[%c0_31, %c0_32, %c0_33] : memref<1x32x256xf32, #tpu.memory_space<vmem>>, vector<1x32x256xf32>
      %83 = vector.shape_cast %82 : vector<1x32x256xf32> to vector<32x256xf32>
      %c0_34 = arith.constant 0 : index
      %c0_35 = arith.constant 0 : index
      %84 = vector.load %arg6[%c0_34, %c0_35] : memref<32x32xf32, #tpu.memory_space<vmem>>, vector<32x32xf32>
      %cst_36 = arith.constant dense<0.000000e+00> : vector<32x256xf32>
      %85 = tpu.matmul %84, %83, %cst_36 {dimension_numbers = #tpu.dot_dimension_numbers<[1], [0], [0], [1], [0, 0, 1, 1], [], []>} : vector<32x32xf32>, vector<32x256xf32>, vector<32x256xf32> -> vector<32x256xf32>
      %c0_37 = arith.constant 0 : index
      %c0_38 = arith.constant 0 : index
      %86 = vector.load %arg7[%c0_37, %c0_38] : memref<32x1xf32, #tpu.memory_space<vmem>>, vector<32x1xf32>
      %87 = vector.broadcast %86 : vector<32x1xf32> to vector<32x256xf32>
      %88 = arith.addf %85, %87 : vector<32x256xf32>
      %c0_39 = arith.constant 0 : index
      %c0_40 = arith.constant 0 : index
      %89 = vector.load %arg9[%c0_39, %c0_40] : memref<32x256xf32, #tpu.memory_space<vmem>>, vector<32x256xf32>
      tpu.vector_store %arg9[%c0_39, %c0_40], %88 {strides = array<i32>} : memref<32x256xf32, #tpu.memory_space<vmem>>, vector<32x256xf32>,
    } else {
    }
    %c0 = arith.constant 0 : index
    %c0_1 = arith.constant 0 : index
    %c0_2 = arith.constant 0 : index
    %3 = vector.load %arg2[%c0, %c0_1, %c0_2] : memref<1x8x32xf32, #tpu.memory_space<vmem>>, vector<1x8x32xf32>
    %4 = vector.shape_cast %3 : vector<1x8x32xf32> to vector<8x32xf32>
    %c0_3 = arith.constant 0 : index
    %c0_4 = arith.constant 0 : index
    %5 = vector.load %arg4[%c0_3, %c0_4] : memref<32x32xf32, #tpu.memory_space<vmem>>, vector<32x32xf32>
    %cst = arith.constant dense<0.000000e+00> : vector<32x8xf32>
    %6 = tpu.matmul %5, %4, %cst {dimension_numbers = #tpu.dot_dimension_numbers<[1], [1], [0], [0], [0, 0, 1, 0], [], []>} : vector<32x32xf32>, vector<8x32xf32>, vector<32x8xf32> -> vector<32x8xf32>
    %c0_5 = arith.constant 0 : index
    %c0_6 = arith.constant 0 : index
    %7 = vector.load %arg5[%c0_5, %c0_6] : memref<32x1xf32, #tpu.memory_space<vmem>>, vector<32x1xf32>
    %8 = vector.broadcast %7 : vector<32x1xf32> to vector<32x8xf32>
    %9 = arith.addf %6, %8 : vector<32x8xf32>
    %c0_7 = arith.constant 0 : index
    %c0_8 = arith.constant 0 : index
    %10 = vector.load %arg9[%c0_7, %c0_8] : memref<32x256xf32, #tpu.memory_space<vmem>>, vector<32x256xf32>
    %11 = vector.extract_strided_slice %9 {offsets = [0, 0], sizes = [8, 8], strides = [1, 1]} : vector<32x8xf32> to vector<8x8xf32>
    %12 = vector.extract_strided_slice %10 {offsets = [0, 0], sizes = [8, 256], strides = [1, 1]} : vector<32x256xf32> to vector<8x256xf32>
    %cst_9 = arith.constant dense<0.000000e+00> : vector<8x256xf32>
    %13 = tpu.matmul %11, %12, %cst_9 {dimension_numbers = #tpu.dot_dimension_numbers<[0], [0], [1], [1], [0, 1, 1, 1], [], []>} : vector<8x8xf32>, vector<8x256xf32>, vector<8x256xf32> -> vector<8x256xf32>
    %14 = vector.extract_strided_slice %9 {offsets = [8, 0], sizes = [8, 8], strides = [1, 1]} : vector<32x8xf32> to vector<8x8xf32>
    %15 = vector.extract_strided_slice %10 {offsets = [8, 0], sizes = [8, 256], strides = [1, 1]} : vector<32x256xf32> to vector<8x256xf32>
    %cst_10 = arith.constant dense<0.000000e+00> : vector<8x256xf32>
    %16 = tpu.matmul %14, %15, %cst_10 {dimension_numbers = #tpu.dot_dimension_numbers<[0], [0], [1], [1], [0, 1, 1, 1], [], []>} : vector<8x8xf32>, vector<8x256xf32>, vector<8x256xf32> -> vector<8x256xf32>
    %17 = vector.extract_strided_slice %9 {offsets = [16, 0], sizes = [8, 8], strides = [1, 1]} : vector<32x8xf32> to vector<8x8xf32>
    %18 = vector.extract_strided_slice %10 {offsets = [16, 0], sizes = [8, 256], strides = [1, 1]} : vector<32x256xf32> to vector<8x256xf32>
    %cst_11 = arith.constant dense<0.000000e+00> : vector<8x256xf32>
    %19 = tpu.matmul %17, %18, %cst_11 {dimension_numbers = #tpu.dot_dimension_numbers<[0], [0], [1], [1], [0, 1, 1, 1], [], []>} : vector<8x8xf32>, vector<8x256xf32>, vector<8x256xf32> -> vector<8x256xf32>
    %20 = vector.extract_strided_slice %9 {offsets = [24, 0], sizes = [8, 8], strides = [1, 1]} : vector<32x8xf32> to vector<8x8xf32>
    %21 = vector.extract_strided_slice %10 {offsets = [24, 0], sizes = [8, 256], strides = [1, 1]} : vector<32x256xf32> to vector<8x256xf32>
    %cst_12 = arith.constant dense<0.000000e+00> : vector<8x256xf32>
    %22 = tpu.matmul %20, %21, %cst_12 {dimension_numbers = #tpu.dot_dimension_numbers<[0], [0], [1], [1], [0, 1, 1, 1], [], []>} : vector<8x8xf32>, vector<8x256xf32>, vector<8x256xf32> -> vector<8x256xf32>
    %cst_13 = arith.constant dense<0xFF800000> : vector<8xf32>
    %23 = vector.multi_reduction <maximumf>, %13, %cst_13 [1] : vector<8x256xf32> to vector<8xf32>
    %24 = vector.shape_cast %23 : vector<8xf32> to vector<8x1xf32>
    %cst_14 = arith.constant dense<0xFF800000> : vector<8xf32>
    %25 = vector.multi_reduction <maximumf>, %16, %cst_14 [1] : vector<8x256xf32> to vector<8xf32>
    %26 = vector.shape_cast %25 : vector<8xf32> to vector<8x1xf32>
    %27 = arith.maximumf %24, %26 : vector<8x1xf32>
    %cst_15 = arith.constant dense<0xFF800000> : vector<8xf32>
    %28 = vector.multi_reduction <maximumf>, %19, %cst_15 [1] : vector<8x256xf32> to vector<8xf32>
    %29 = vector.shape_cast %28 : vector<8xf32> to vector<8x1xf32>
    %30 = arith.maximumf %27, %29 : vector<8x1xf32>
    %cst_16 = arith.constant dense<0xFF800000> : vector<8xf32>
    %31 = vector.multi_reduction <maximumf>, %22, %cst_16 [1] : vector<8x256xf32> to vector<8xf32>
    %32 = vector.shape_cast %31 : vector<8xf32> to vector<8x1xf32>
    %33 = arith.maximumf %30, %32 : vector<8x1xf32>
    %34 = vector.broadcast %33 : vector<8x1xf32> to vector<8x256xf32>
    %35 = arith.subf %13, %34 : vector<8x256xf32>
    %36 = math.exp %35 : vector<8x256xf32>
    %37 = vector.broadcast %33 : vector<8x1xf32> to vector<8x256xf32>
    %38 = arith.subf %16, %37 : vector<8x256xf32>
    %39 = math.exp %38 : vector<8x256xf32>
    %40 = vector.broadcast %33 : vector<8x1xf32> to vector<8x256xf32>
    %41 = arith.subf %19, %40 : vector<8x256xf32>
    %42 = math.exp %41 : vector<8x256xf32>
    %43 = vector.broadcast %33 : vector<8x1xf32> to vector<8x256xf32>
    %44 = arith.subf %22, %43 : vector<8x256xf32>
    %45 = math.exp %44 : vector<8x256xf32>
    %cst_17 = arith.constant dense<0.000000e+00> : vector<8xf32>
    %46 = vector.multi_reduction <add>, %36, %cst_17 [1] : vector<8x256xf32> to vector<8xf32>
    %47 = vector.shape_cast %46 : vector<8xf32> to vector<8x1xf32>
    %cst_18 = arith.constant dense<0.000000e+00> : vector<8xf32>
    %48 = vector.multi_reduction <add>, %39, %cst_18 [1] : vector<8x256xf32> to vector<8xf32>
    %49 = vector.shape_cast %48 : vector<8xf32> to vector<8x1xf32>
    %50 = arith.addf %47, %49 : vector<8x1xf32>
    %cst_19 = arith.constant dense<0.000000e+00> : vector<8xf32>
    %51 = vector.multi_reduction <add>, %42, %cst_19 [1] : vector<8x256xf32> to vector<8xf32>
    %52 = vector.shape_cast %51 : vector<8xf32> to vector<8x1xf32>
    %53 = arith.addf %50, %52 : vector<8x1xf32>
    %cst_20 = arith.constant dense<0.000000e+00> : vector<8xf32>
    %54 = vector.multi_reduction <add>, %45, %cst_20 [1] : vector<8x256xf32> to vector<8xf32>
    %55 = vector.shape_cast %54 : vector<8xf32> to vector<8x1xf32>
    %56 = arith.addf %53, %55 : vector<8x1xf32>
    %57 = tpu.reciprocal %56 {approx = true} : vector<8x1xf32> -> vector<8x1xf32>
    %58 = arith.mulf %56, %57 : vector<8x1xf32>
    %cst_21 = arith.constant 2.000000e+00 : f32
    %59 = vector.broadcast %cst_21 : f32 to vector<8x1xf32>
    %60 = arith.subf %59, %58 : vector<8x1xf32>
    %61 = arith.mulf %57, %60 : vector<8x1xf32>
    %62 = vector.broadcast %61 : vector<8x1xf32> to vector<8x256xf32>
    %63 = arith.mulf %36, %62 : vector<8x256xf32>
    %c0_22 = arith.constant 0 : index
    %c0_23 = arith.constant 0 : index
    %c0_24 = arith.constant 0 : index
    %64 = vector.load %arg8[%c0_22, %c0_23, %c0_24] : memref<1x8x1024xf32, #tpu.memory_space<vmem>>, vector<1x8x256xf32>
    %65 = vector.shape_cast %64 : vector<1x8x256xf32> to vector<8x256xf32>
    %66 = vector.shape_cast %63 : vector<8x256xf32> to vector<1x8x256xf32>
    tpu.vector_store %arg8[%c0_22, %c0_23, %c0_24], %66 {strides = array<i32>} : memref<1x8x1024xf32, #tpu.memory_space<vmem>>, vector<1x8x256xf32>,
    %67 = vector.broadcast %61 : vector<8x1xf32> to vector<8x256xf32>
    %68 = arith.mulf %39, %67 : vector<8x256xf32>
    %c0_25 = arith.constant 0 : index
    %c0_26 = arith.constant 0 : index
    %c256 = arith.constant 256 : index
    %69 = vector.load %arg8[%c0_25, %c0_26, %c256] : memref<1x8x1024xf32, #tpu.memory_space<vmem>>, vector<1x8x256xf32>
    %70 = vector.shape_cast %69 : vector<1x8x256xf32> to vector<8x256xf32>
    %71 = vector.shape_cast %68 : vector<8x256xf32> to vector<1x8x256xf32>
    tpu.vector_store %arg8[%c0_25, %c0_26, %c256], %71 {strides = array<i32>} : memref<1x8x1024xf32, #tpu.memory_space<vmem>>, vector<1x8x256xf32>,
    %72 = vector.broadcast %61 : vector<8x1xf32> to vector<8x256xf32>
    %73 = arith.mulf %42, %72 : vector<8x256xf32>
    %c0_27 = arith.constant 0 : index
    %c0_28 = arith.constant 0 : index
    %c512 = arith.constant 512 : index
    %74 = vector.load %arg8[%c0_27, %c0_28, %c512] : memref<1x8x1024xf32, #tpu.memory_space<vmem>>, vector<1x8x256xf32>
    %75 = vector.shape_cast %74 : vector<1x8x256xf32> to vector<8x256xf32>
    %76 = vector.shape_cast %73 : vector<8x256xf32> to vector<1x8x256xf32>
    tpu.vector_store %arg8[%c0_27, %c0_28, %c512], %76 {strides = array<i32>} : memref<1x8x1024xf32, #tpu.memory_space<vmem>>, vector<1x8x256xf32>,
    %77 = vector.broadcast %61 : vector<8x1xf32> to vector<8x256xf32>
    %78 = arith.mulf %45, %77 : vector<8x256xf32>
    %c0_29 = arith.constant 0 : index
    %c0_30 = arith.constant 0 : index
    %c768 = arith.constant 768 : index
    %79 = vector.load %arg8[%c0_29, %c0_30, %c768] : memref<1x8x1024xf32, #tpu.memory_space<vmem>>, vector<1x8x256xf32>
    %80 = vector.shape_cast %79 : vector<1x8x256xf32> to vector<8x256xf32>
    %81 = vector.shape_cast %78 : vector<8x256xf32> to vector<1x8x256xf32>
    tpu.vector_store %arg8[%c0_29, %c0_30, %c768], %81 {strides = array<i32>} : memref<1x8x1024xf32, #tpu.memory_space<vmem>>, vector<1x8x256xf32>,
    return
  }
  func.func @transform_0(%arg0: i32, %arg1: i32) -> (i32, i32, i32) {
    %c0_i32 = arith.constant 0 : i32
    %c0_i32_0 = arith.constant 0 : i32
    return %arg0, %arg1, %c0_i32 : i32, i32, i32
  }
  func.func @transform_1(%arg0: i32, %arg1: i32) -> (i32, i32, i32) {
    %c0_i32 = arith.constant 0 : i32
    %c0_i32_0 = arith.constant 0 : i32
    %c0_i32_1 = arith.constant 0 : i32
    return %arg0, %c0_i32, %c0_i32_0 : i32, i32, i32
  }
  func.func @transform_2(%arg0: i32, %arg1: i32) -> (i32, i32) {
    %c0_i32 = arith.constant 0 : i32
    %c0_i32_0 = arith.constant 0 : i32
    %c0_i32_1 = arith.constant 0 : i32
    return %c0_i32, %c0_i32_0 : i32, i32
  }
  func.func @transform_3(%arg0: i32, %arg1: i32) -> (i32, i32) {
    %c0_i32 = arith.constant 0 : i32
    %c0_i32_0 = arith.constant 0 : i32
    %c0_i32_1 = arith.constant 0 : i32
    return %c0_i32, %c0_i32_0 : i32, i32
  }
  func.func @transform_4(%arg0: i32, %arg1: i32) -> (i32, i32) {
    %c0_i32 = arith.constant 0 : i32
    %c0_i32_0 = arith.constant 0 : i32
    %c0_i32_1 = arith.constant 0 : i32
    return %c0_i32, %c0_i32_0 : i32, i32
  }
  func.func @transform_5(%arg0: i32, %arg1: i32) -> (i32, i32) {
    %c0_i32 = arith.constant 0 : i32
    %c0_i32_0 = arith.constant 0 : i32
    %c0_i32_1 = arith.constant 0 : i32
    return %c0_i32, %c0_i32_0 : i32, i32
  }
  func.func @transform_6(%arg0: i32, %arg1: i32) -> (i32, i32, i32) {
    %c0_i32 = arith.constant 0 : i32
    %c0_i32_0 = arith.constant 0 : i32
    return %arg0, %arg1, %c0_i32 : i32, i32, i32
  }
}

</mosaic_0001>

<bundles_post_ra>
// kernel: tpu_custom_call.1
= control target key start
LH: loop header
LB: loop body
LE: loop exit
PB: predicated region body
PF: predicated region fallthrough
CT: control target
= control target key end

     0   :  { %s1564_s0 = inlined_call_operand.hbm [shape: f32[2,8,32], index: 0, kind: input, shape index: {}]   ;;  %s1565_s1 = inlined_call_operand.hbm [shape: f32[2,32,256], index: 1, kind: input, shape index: {}]   ;;  %s1566_s2 = inlined_call_operand.vmem [shape: f32[32,32], index: 2, kind: input, shape index: {}]   ;;  %s1567_s3 = inlined_call_operand.vmem [shape: f32[32,1], index: 3, kind: input, shape index: {}]   ;;  %s1568_s4 = inlined_call_operand.vmem [shape: f32[32,32], index: 4, kind: input, shape index: {}]   ;;  %s1569_s5 = inlined_call_operand.vmem [shape: f32[32,1], index: 5, kind: input, shape index: {}]   ;;  %s1570_s6 = inlined_call_operand.hbm [shape: f32[2,8,1024], index: 6, kind: output, shape index: {}]  }
   0x1   :  { %1572 = sst [smem:[#allocation14_spill]] %s1564_s0 }
   0x2   :  { %11 = vsyncpa [#allocation4], 0 }
   0x3   :  { %13 = vsyncpa [#allocation4 + $0x1], 0 }
   0x4   :  { %14 = vsyncpa [#allocation7], 0 }
   0x5   :  { %16 = vsyncpa [#allocation7 + $0x1], 0 }
   0x6   :  { %17 = vsyncpa [#allocation5], 0 }
   0x7   :  { %19 = vsyncpa [#allocation5 + $0x1], 0  ;;  %s1347_s21 = smov 0   ;;  %s1349_s22 = smov 0  }
   0x8   :  { %s1351_s23 = smov 0   ;;  %s1353_s24 = smov 0  }
   0x9   :  { %s1355_s25 = smov 0   ;;  %s1357_s26 = smov 0  }
   0xa LB: > { %s1028_s27 = sadd.s32 4294967295, %s1307_s26   ;;  %s1029_s28 = sadd.s32 4294967294, %s1307_s26   ;;  %s1307_s26 = sphi %s1357_s26, %s25_s26   ;;  %s1303_s25 = sphi %s1355_s25, %s1587_s25   ;;  %s1299_s24 = sphi %s1353_s24, %s1586_s24   ;;  %s1295_s23 = sphi %s1351_s23, %s1585_s23   ;;  %s1291_s22 = sphi %s1349_s22, %s1584_s22   ;;  %s1287_s21 = sphi %s1347_s21, %s1583_s21  }
   0xb   : > { %s37_s29 = sadd.s32 1, %s1303_s25  ;;  %s46_s30 = sadd.s32 1, %s1295_s23 }
   0xc   : > { %p39_p0 = scmp.ge.s32.totalorder %s37_s29, 2  ;;  %p53_p1 = scmp.ne.s32.totalorder %s1295_s23, %s1291_s22 }
   0xd   : > { %p54_p2 = scmp.eq.s32.totalorder %s1307_s26, 0  ;;  %p59_p3 = scmp.ne.s32.totalorder %s1291_s22, %s1287_s21 }
   0xe   : > { %s1589_s29 = smov (%p39_p0, %s37_s29), 0  ;;  %p60_p5 = scmp.eq.s32.totalorder %s1028_s27, 0 }
   0xf   : > { %1573 = sst [smem:[#allocation12_spill]] %s1589_s29  ;;  %p1388_p4 = por %p54_p2, %p53_p1 }
  0x10   : > { %s41_s8 = ssub.s32 %s1303_s25, %s1589_s29  ;;  %p195_p6 = scmp.eq.s32.totalorder %s1028_s27, 1 }
  0x11   : > { %p44_p7 = scmp.eq.s32.totalorder %s41_s8, 0  ;;  %p1394_p8 = por %p60_p5, %p59_p3 }
  0x12   : > { %p1398_p9 = por %p195_p6, %p53_p1  ;;  %p201_p10 = scmp.eq.s32.totalorder %s1029_s28, 1 }
  0x13   : > { %s1403_s11 = scalar_select %p44_p7, %s1295_s23, %s46_s30  }
  0x14   : > { %p1405_p11 = por %p201_p10, %p59_p3  ;;  %p1031_p12 = scmp.ge.s32.totalorder %s1307_s26, 2 }
  0x15   : > { %1577 = sst [smem:[#allocation13_spill]] %s1403_s11  ;;  %p1086_p13 = scmp.lt.s32.totalorder %s1307_s26, 2 }
  0x16   : > { %s1412_s13 = sand.u32 1, %s1295_s23   ;;  %s1033_s15 = sshll.u32 %s1303_s25, 3 }
  0x17   : > { %s1032_s14 = sshll.u32 %s1412_s13, 3  ;;  %s1579_s0 = sld [smem:[#allocation14_spill]] }
  0x18   : > { %s237_s19 = scalar_lea.vmem [#allocation3], %s1032_s14  ;;  %p1421_p0 = pnand %p1086_p13, %p1388_p4 }
  0x19   : > { %s246_s20 = sshll.u32 %s237_s19, 4  ;;  %p1037_p1 = scmp.ge.s32.totalorder %s1307_s26, 1  ;;  %s247_s20 = int_to_ptr.vmem [resolvable:$true] %s246_s20 }
  0x1a   : > { %p273_p2 = scmp.lt.s32.totalorder %s1307_s26, 3  ;;  %s234_s30 = scalar_lea.sflag [#allocation4], %s1412_s13 }
  0x1b   : > { %s1034_s8 = sshll.u32 %s1412_s13, 6  ;;  %s1067_s14 = sshll.u32 %s1303_s25, 6 }
  0x1c   : > { %p274_p3 = pnand %p1037_p1, %p273_p2  ;;  %s262_s17 = scalar_lea.hbm %s1565_s1, %s1067_s14 }
  0x1d   : > { %s242_s18 = scalar_lea.hbm %s1579_s0, %s1033_s15  ;;  %s263_s19 = sshll.u32 %s262_s17, 4  ;;  %s264_s19 = int_to_ptr.hbm [resolvable:$true] %s263_s19 }
  0x1e   : > { %s244_s27 = sshll.u32 %s242_s18, 4  ;;  %s257_s18 = scalar_lea.vmem [#allocation6], %s1034_s8  ;;  %s245_s27 = int_to_ptr.hbm [resolvable:$true] %s244_s27 }
  0x1f   : > { %1078 = dma.hbm_to_vmem [thread:$0]  (!%p1421_p0), %s245_s27, 128, %s247_s20, %s234_s30  }
  0x20   : > { %s265_s7 = sshll.u32 %s257_s18, 4  ;;  %s254_s0 = scalar_lea.sflag [#allocation7], %s1412_s13  ;;  %s266_s7 = int_to_ptr.vmem [resolvable:$true] %s265_s7 }
  0x21   : > { %s1309_s29 = smov 256   ;;  %s1310_s11 = smov 16  }
  0x22   : > { %1081 = dma.hbm_to_vmem [thread:$0]  (!%p1421_p0), %s264_s19, 1024, %s266_s7, %s254_s0, %s1309_s29, %s1309_s29, %s1310_s11  }
  0x23   : > { %277 = sbr.rel (%p274_p3) target bundleno = 803 (0x323), region = 44  ;;  %s1439_s20 = sand.u32 (!%p274_p3), 1, %s1291_s22  }
  0x24   : > { %s1038_s27 = sshll.u32 (!%p274_p3), %s1439_s20, 3  ;;  %s280_s30 = scalar_lea.sflag (!%p274_p3), [#allocation4], %s1439_s20 }
  0x25   : > { %s283_s14 = scalar_lea.vmem (!%p274_p3), [#allocation3], %s1038_s27 }
  0x28   : > { %1274 = dma.done.wait (%p1394_p8), %s280_s30, 128  }
  0x29   : > { %1276 = vsyncadd (%p1394_p8), %s280_s30, 4294967168  ;;  %s1039_s0 = sshll.u32 %s1439_s20, 6  ;;  %s290_s29 = scalar_lea.sflag [#allocation7], %s1439_s20 }
  0x2a   : > { %s293_s11 = scalar_lea.vmem [#allocation6], %s1039_s0 }
  0x2b   : > { %1278 = dma.done.wait (%p1394_p8), %s290_s29, 1024  }
  0x2c   : > { %1280 = vsyncadd (%p1394_p8), %s290_s29, 4294966272  ;;  %v1311_v0 = vmov 0   ;;  %vm368_vm0 = vcmask 261120   ;;  %v447_v1 = vld [vmem:[%s283_s14] sm:$0xff]  ;;  %v336_v4 = vld [vmem:[%s293_s11 + $0x20] sm:$0xff]  ;;  %vm561_vm1 = vcmask 64512  }
  0x2d   : > { %1140 = vset.pattern.permute.xlu0 %v1311_v0  ;;  %1141 = vset.pattern.permute.xlu1 %v1311_v0  ;;  %v338_v2 = vld [vmem:[%s293_s11 + $0x30] sm:$0xff]  ;;  %v339_v3 = vld [vmem:[%s293_s11 + $0x38] sm:$0xff]  ;;  %v337_v6 = vld [vmem:[%s293_s11 + $0x28] sm:$0xff]  ;;  %s1068_s9 = sshll.u32 %s1299_s24, 6  ;;  %s327_s17 = scalar_lea.vmem [#allocation8], %s1039_s0 }
  0x2e   : > { %1142 = vset.pattern.permute.xlu2 %v1311_v0  ;;  %1049 = vmatpush.xpose.msk.msra.mxu2 %vm368_vm0, %v447_v1  ;;  %v448_v5 = vld [vmem:[%s1566_s2] sm:$0xff]  ;;  %v335_v8 = vld [vmem:[%s293_s11 + $0x18] sm:$0xff]  ;;  %v332_v10 = vld [vmem:[%s293_s11] sm:$0xff]  ;;  %s918_s16 = scalar_lea.hbm %s1570_s6, %s1068_s9  ;;  %s920_s18 = sshll.u32 %s327_s17, 4  ;;  %s921_s18 = int_to_ptr.vmem [resolvable:$true] %s920_s18 }
  0x2f   : > { %393 = vmatpush.msra.mxu0 %v338_v2  ;;  %422 = vmatpush.msra.mxu1 %v339_v3  ;;  %v334_v7 = vld [vmem:[%s293_s11 + $0x10] sm:$0xff]  ;;  %v333_v12 = vld [vmem:[%s293_s11 + $0x8] sm:$0xff]  ;;  %v453_v13 = vld [vmem:[%s1567_s3 + $0x8] sm:$0xff]  ;;  %s922_s24 = sshll.u32 %s918_s16, 4  ;;  %s905_s7 = scalar_lea.sflag [#allocation5], %s1439_s20  ;;  %s923_s24 = int_to_ptr.hbm [resolvable:$true] %s922_s24 }
  0x30   : > { %v452_v9 = vld [vmem:[%s1567_s3] sm:$0xff]  ;;  %463 = vperm.xlu1 %1141, %v453_v13   ;;  %v454_v14 = vld [vmem:[%s1567_s3 + $0x10] sm:$0xff]  ;;  %v449_v15 = vld [vmem:[%s1566_s2 + $0x8] sm:$0xff]  ;;  %s1235_s19 = sshra.s32 %s923_s24, 4  ;;  %s1241_s14 = scalar_lea.hbm %s1570_s6, 128  ;;  %s1236_s19 = int_to_ptr.hbm [resolvable:$true] %s1235_s19 }
  0x31   : > { %394 = vmatpush.msra.mxu0 %v336_v4  ;;  %1050 = vmatmul.msk.f32.vlgmr.msra.gmra.mxu2 %vm368_vm0, %v448_v5  ;;  %v340_v11 = vld [vmem:[%s1568_s4] sm:$0xff]  ;;  %v345_v17 = vld [vmem:[%s1569_s5 + $0x8] sm:$0xff]  ;;  %v455_v19 = vld [vmem:[%s1567_s3 + $0x18] sm:$0xff]  ;;  %s1237_s0 = scalar_lea.hbm %s1236_s19, 64  ;;  %p1242_p7 = scmp.lt.s32.totalorder %s1236_s19, %s1570_s6 }
  0x32   : > { %423 = vmatpush.msra.mxu1 %v337_v6  ;;  %458 = vperm.xlu0 %1140, %v452_v9   ;;  %v344_v16 = vld [vmem:[%s1569_s5] sm:$0xff]  ;;  %v341_v18 = vld [vmem:[%s1568_s4 + $0x8] sm:$0xff]  ;;  %v450_v20 = vld [vmem:[%s1566_s2 + $0x10] sm:$0xff]  ;;  %p1238_p4 = scmp.ne.s32.totalorder %s1236_s19, %s1237_s0  ;;  %p1243_p8 = scmp.lt.s32.totalorder %s1241_s14, %s1237_s0 }
  0x33   : > { %395 = vmatpush.msra.mxu0 %v334_v7  ;;  %468 = vperm.xlu2 %1142, %v454_v14   ;;  %v346_v21 = vld [vmem:[%s1569_s5 + $0x10] sm:$0xff]  ;;  %v347_v23 = vld [vmem:[%s1569_s5 + $0x18] sm:$0xff] }
  0x34   : > { %424 = vmatpush.msra.mxu1 %v335_v8  ;;  %v342_v22 = vld [vmem:[%s1568_s4 + $0x10] sm:$0xff]  ;;  %v451_v24 = vld [vmem:[%s1566_s2 + $0x18] sm:$0xff]  ;;  %p1239_p5 = pnand %p1238_p4, %p1398_p9  ;;  %p1244_p10 = por %p1243_p8, %p1242_p7 }
  0x35   : > { %396 = vmatpush.msra.mxu0 %v332_v10  ;;  %v343_v25 = vld [vmem:[%s1568_s4 + $0x18] sm:$0xff] }
  0x36   : > { %1041 = vmatmul.msk.f32.vlgmr.msra.gmra.mxu0 %vm368_vm0, %v340_v11  ;;  %425 = vmatpush.msra.mxu1 %v333_v12  ;;  %p1240_p6 = pneg %p1239_p5 }
  0x37   : > { %1045 = vmatmul.msk.f32.vlgmr.msra.gmra.mxu1 %vm368_vm0, %v340_v11 }
  0x38   : > { %355 = vperm.xlu1 %1141, %v345_v17   ;;  %p1245_p13 = pnand %p1244_p10, %p1240_p6 }
  0x39   : > { %1051 = vmatmul.msk.f32.gmra.mxu2 %vm368_vm0, %v449_v15 }
  0x3a   : > { %350 = vperm.xlu0 %1140, %v344_v16  }
  0x3b   : > { %473 = vperm.xlu2 %1142, %v455_v19  }
  0x3e   : > { %1042 = vmatmul.msk.f32.gmra.mxu0 %vm368_vm0, %v341_v18 }
  0x3f   : > { %1046 = vmatmul.msk.f32.gmra.mxu1 %vm368_vm0, %v341_v18 }
  0x40   : > { %360 = vperm.xlu1 %1141, %v346_v21  }
  0x41   : > { %1052 = vmatmul.msk.f32.gmra.mxu2 %vm368_vm0, %v450_v20 }
  0x43   : > { %365 = vperm.xlu2 %1142, %v347_v23  }
  0x46   : > { %1043 = vmatmul.msk.f32.gmra.mxu0 %vm368_vm0, %v342_v22 }
  0x47   : > { %1047 = vmatmul.msk.f32.gmra.mxu1 %vm368_vm0, %v342_v22 }
  0x49   : > { %1053 = vmatmul.msk.f32.gmra.mxu2 %vm368_vm0, %v451_v24 }
  0x4e   : > { %1044 = vmatmul.msk.f32.gmra.mxu0 %vm368_vm0, %v343_v25 }
  0x4f   : > { %1048 = vmatmul.msk.f32.gmra.mxu1 %vm368_vm0, %v343_v25 }
  0x8d   : > { %v469_v34 = vpop.permute.xlu2 %468 }
  0x95   : > { %v474_v43 = vpop.permute.xlu2 %473 }
  0x9d   : > { %v366_v50 = vpop.permute.xlu2 %365 }
  0xa2   : > { %v464_v27 = vpop.permute.xlu1 %463 }
  0xa4   : > { %v459_v26 = vpop.permute.xlu0 %458 }
  0xaa   : > { %v356_v36 = vpop.permute.xlu1 %355 }
  0xac   : > { %v351_v28 = vpop.permute.xlu0 %350 }
  0xb2   : > { %v361_v44 = vpop.permute.xlu1 %360 }
  0xb3   : > { %v398_v29 = vpop.f32.mrf.mxu0 }
  0xb4   : > { %v427_v30 = vpop.f32.mrf.mxu1  ;;  %v399_v31 = vadd.f32 %v398_v29, %v351_v28  ;;  %v509_v33 = vpop.f32.mrf.mxu2 }
  0xb5   : > { %v428_v32 = vadd.f32 %v427_v30, %v351_v28  ;;  %v510_v35 = vadd.f32 %v509_v33, %v459_v26 }
  0xb6   : > { %580 = vmatpush.msra.mxu3 %v399_v31 }
  0xb7   : > { %529 = vxpose.xlu0.b32.start.end [1/1] (short) (narrow) %v510_v35, 8 }
  0xb8   : > { %600 = vmatpush.msrb.mxu3 %v428_v32 }
  0xbb   : > { %v401_v37 = vpop.f32.mrf.mxu0 }
  0xbc   : > { %v402_v38 = vadd.f32 %v401_v37, %v356_v36  ;;  %v430_v39 = vpop.f32.mrf.mxu1  ;;  %v512_v41 = vpop.f32.mrf.mxu2 }
  0xbd   : > { %v431_v40 = vadd.f32 %v430_v39, %v356_v36  ;;  %v513_v42 = vadd.f32 %v512_v41, %v464_v27 }
  0xbf   : > { %605 = vxpose.xlu1.b32.start.end [1/1] (short) (narrow) %v513_v42, 8 }
  0xc3   : > { %v404_v45 = vpop.f32.mrf.mxu0 }
  0xc4   : > { %v433_v46 = vpop.f32.mrf.mxu1  ;;  %v515_v48 = vpop.f32.mrf.mxu2  ;;  %v405_v60 = vadd.f32 %v404_v45, %v361_v44 }
  0xc5   : > { %v434_v47 = vadd.f32 %v433_v46, %v361_v44  ;;  %v516_v49 = vadd.f32 %v515_v48, %v469_v34 }
  0xc7   : > { %750 = vmatpush.msrb.mxu2 %v434_v47  ;;  %680 = vxpose.xlu2.b32.start.end [1/1] (short) (narrow) %v516_v49, 8 }
  0xcb   : > { %v407_v51 = vpop.f32.mrf.mxu0 }
  0xcc   : > { %v408_v52 = vadd.f32 %v407_v51, %v366_v50  ;;  %v436_v53 = vpop.f32.mrf.mxu1  ;;  %v518_v54 = vpop.f32.mrf.mxu2 }
  0xcd   : > { %v437_v55 = vadd.f32 %v436_v53, %v366_v50  ;;  %v519_v56 = vadd.f32 %v518_v54, %v474_v43 }
  0xce   : > { %805 = vmatpush.msrb.mxu0 %v408_v52 }
  0xcf   : > { %825 = vmatpush.msrb.mxu1 %v437_v55  ;;  %755 = vxpose.xlu0.b32.start.end [1/1] (short) (narrow) %v519_v56, 8 }
 0x15b   : > { %v545_v57 = vpop.trf.xlu0 }
 0x15c   : > { %1054 = vmatmul.msk.f32.vlgmr.msra.gmra.mxu3 %vm561_vm1, %v545_v57 }
 0x15d   : > { %655 = vmatpush.msra.mxu3 %v402_v38 }
 0x160   : > { %v696_v58 = vpop.trf.xlu2 }
 0x161   : > { %1059 = vmatmul.msk.f32.vlgmr.msrb.gmra.mxu2 %vm561_vm1, %v696_v58 }
 0x163   : > { %v621_v59 = vpop.trf.xlu1 }
 0x164   : > { %1055 = vmatmul.msk.f32.vlgmr.msrb.gmra.mxu3 %vm561_vm1, %v545_v57 }
 0x165   : > { %675 = vmatpush.msrb.mxu3 %v431_v40 }
 0x16c   : > { %1056 = vmatmul.msk.f32.vlgmr.msra.gmra.mxu3 %vm561_vm1, %v621_v59 }
 0x16d   : > { %730 = vmatpush.msra.mxu3 %v405_v60 }
 0x173   : > { %v771_v61 = vpop.trf.xlu0 }
 0x174   : > { %1057 = vmatmul.msk.f32.vlgmr.msrb.gmra.mxu3 %vm561_vm1, %v621_v59  ;;  %1060 = vmatmul.msk.f32.vlgmr.msrb.gmra.mxu0 %vm561_vm1, %v771_v61 }
 0x175   : > { %1061 = vmatmul.msk.f32.vlgmr.msrb.gmra.mxu1 %vm561_vm1, %v771_v61 }
 0x17c   : > { %1058 = vmatmul.msk.f32.vlgmr.msra.gmra.mxu3 %vm561_vm1, %v696_v58 }
 0x1df   : > { %v582_v62 = vpop.f32.mrf.mxu3 }
 0x1e4   : > { %v752_v7 = vpop.f32.mrf.mxu2 }
 0x1e7   : > { %v602_v63 = vpop.f32.mrf.mxu3 }
 0x1e8   : > { %v830_v0 = vmax.f32 %v582_v62, %v602_v63 }
 0x1ea   : > { %831 = vmax.xlane.f32.xlu0 %v830_v0 }
 0x1ef   : > { %v657_v1 = vpop.f32.mrf.mxu3 }
 0x1f1   : > { %v807_v2 = vpop.f32.mrf.mxu0 }
 0x1f2   : > { %v827_v3 = vpop.f32.mrf.mxu1 }
 0x1f3   : > { %v841_v4 = vmax.f32 %v807_v2, %v827_v3 }
 0x1f5   : > { %842 = vmax.xlane.f32.xlu0 %v841_v4 }
 0x1f7   : > { %v677_v5 = vpop.f32.mrf.mxu3 }
 0x1f8   : > { %v833_v6 = vmax.f32 %v657_v1, %v677_v5 }
 0x1fa   : > { %834 = vmax.xlane.f32.xlu2 %v833_v6 }
 0x1ff   : > { %v732_v8 = vpop.f32.mrf.mxu3 }
 0x200   : > { %v837_v9 = vmax.f32 %v732_v8, %v752_v7 }
 0x202   : > { %838 = vmax.xlane.f32.xlu1 %v837_v9 }
 0x25d   : > { %v832_v10 = vpop.xlane.xlu0 %831 }
 0x268   : > { %v843_v14 = vpop.xlane.xlu0 %842 }
 0x26d   : > { %v835_v11 = vpop.xlane.xlu2 %834 }
 0x26e   : > { %v836_v12 = vmax.f32 %v832_v10, %v835_v11 }
 0x275   : > { %v839_v13 = vpop.xlane.xlu1 %838 }
 0x276   : > { %v840_v15 = vmax.f32 %v836_v12, %v839_v13 }
 0x278   : > { %v844_v16 = vmax.f32 %v840_v15, %v843_v14 }
 0x27a   : > { %v857_v17 = vsub.f32 %v732_v8, %v844_v16  ;;  %v858_v18 = vsub.f32 %v752_v7, %v844_v16  ;;  %v851_v19 = vsub.f32 %v657_v1, %v844_v16  ;;  %v852_v20 = vsub.f32 %v677_v5, %v844_v16 }
 0x27b   : > { %v845_v21 = vsub.f32 %v582_v62, %v844_v16  ;;  %v846_v22 = vsub.f32 %v602_v63, %v844_v16  ;;  %v863_v29 = vsub.f32 %v807_v2, %v844_v16  ;;  %v864_v30 = vsub.f32 %v827_v3, %v844_v16 }
 0x27c   : > { %v859_v23 = vmul.f32 1.442695, %v857_v17  ;;  %v861_v24 = vmul.f32 1.442695, %v858_v18  ;;  %v853_v25 = vmul.f32 1.442695, %v851_v19 }
 0x27d   : > { %v855_v26 = vmul.f32 1.442695, %v852_v20  ;;  %v847_v27 = vmul.f32 1.442695, %v845_v21  ;;  %v849_v28 = vmul.f32 1.442695, %v846_v22 }
 0x27e   : > { %1143 = vpow2.f32 %v859_v23  ;;  %v865_v32 = vmul.f32 1.442695, %v863_v29  ;;  %v867_v34 = vmul.f32 1.442695, %v864_v30 }
 0x27f   : > { %1145 = vpow2.f32 %v861_v24 }
 0x280   : > { %1147 = vpow2.f32 %v853_v25 }
 0x281   : > { %1149 = vpow2.f32 %v855_v26 }
 0x282   : > { %1151 = vpow2.f32 %v847_v27 }
 0x283   : > { %1153 = vpow2.f32 %v849_v28 }
 0x284   : > { %v1144_v31 = vpop.eup %1143  ;;  %1155 = vpow2.f32 %v865_v32 }
 0x285   : > { %v1146_v33 = vpop.eup %1145  ;;  %1157 = vpow2.f32 %v867_v34 }
 0x286   : > { %v1148_v35 = vpop.eup %1147  ;;  %v876_v36 = vadd.f32 %v1146_v33, %v1144_v31 }
 0x287   : > { %v1150_v37 = vpop.eup %1149 }
 0x288   : > { %v1152_v38 = vpop.eup %1151  ;;  %877 = vadd.xlane.f32.xlu0 %v876_v36  ;;  %v872_v39 = vadd.f32 %v1150_v37, %v1148_v35 }
 0x289   : > { %v1154_v40 = vpop.eup %1153 }
 0x28a   : > { %873 = vadd.xlane.f32.xlu2 %v872_v39  ;;  %v869_v41 = vadd.f32 %v1154_v40, %v1152_v38  ;;  %v1156_v42 = vpop.eup %1155 }
 0x28b   : > { %v1158_v43 = vpop.eup %1157 }
 0x28c   : > { %870 = vadd.xlane.f32.xlu1 %v869_v41  ;;  %v880_v44 = vadd.f32 %v1158_v43, %v1156_v42 }
 0x294   : > { %881 = vadd.xlane.f32.xlu1 %v880_v44 }
 0x2fb   : > { %v878_v48 = vpop.xlane.xlu0 %877 }
 0x2fd   : > { %v874_v45 = vpop.xlane.xlu2 %873 }
 0x2ff   : > { %v871_v46 = vpop.xlane.xlu1 %870 }
 0x300   : > { %v875_v47 = vadd.f32 %v874_v45, %v871_v46 }
 0x302   : > { %v879_v49 = vadd.f32 %v878_v48, %v875_v47 }
 0x307   : > { %v882_v50 = vpop.xlane.xlu1 %881 }
 0x308   : > { %v883_v51 = vadd.f32 %v882_v50, %v879_v49 }
 0x30a   : > { %1159 = vrcp.f32 %v883_v51 }
 0x310   : > { %v1160_v52 = vpop.eup %1159 }
 0x311   : > { %v885_v53 = vmul.f32 %v1160_v52, %v883_v51 }
 0x313   : > { %v886_v54 = vsub.f32 2.0, %v885_v53 }
 0x315   : > { %v887_v55 = vmul.f32 %v1160_v52, %v886_v54 }
 0x317   : > { %v888_v56 = vmul.f32 %v1152_v38, %v887_v55  ;;  %v889_v57 = vmul.f32 %v1154_v40, %v887_v55  ;;  %v892_v58 = vmul.f32 %v1148_v35, %v887_v55  ;;  %v893_v59 = vmul.f32 %v1150_v37, %v887_v55 }
 0x318   : > { %v896_v60 = vmul.f32 %v1144_v31, %v887_v55  ;;  %v897_v61 = vmul.f32 %v1146_v33, %v887_v55  ;;  %v900_v62 = vmul.f32 %v1156_v42, %v887_v55  ;;  %v901_v63 = vmul.f32 %v1158_v43, %v887_v55 }
 0x319   : > { %890 = vst [vmem:[%s327_s17] sm:$0xff] %v888_v56 }
 0x31a   : > { %891 = vst [vmem:[%s327_s17 + $0x8] sm:$0xff] %v889_v57 }
 0x31b   : > { %894 = vst [vmem:[%s327_s17 + $0x10] sm:$0xff] %v892_v58 }
 0x31c   : > { %895 = vst [vmem:[%s327_s17 + $0x18] sm:$0xff] %v893_v59 }
 0x31d   : > { %898 = vst [vmem:[%s327_s17 + $0x20] sm:$0xff] %v896_v60 }
 0x31e   : > { %899 = vst [vmem:[%s327_s17 + $0x28] sm:$0xff] %v897_v61 }
 0x31f   : > { %902 = vst [vmem:[%s327_s17 + $0x30] sm:$0xff] %v900_v62 }
 0x320   : > { %903 = vst [vmem:[%s327_s17 + $0x38] sm:$0xff] %v901_v63 }
 0x321   : > { %1248 = shalt.err (!%p1245_p13)
}
 0x322   : > { %1073 = dma.vmem_to_hbm [thread:$0]  (%p1398_p9), %s921_s18, 1024, %s923_s24, %s905_s7  }
 0x323 PF: > { %s934_s20 = sand.u32 1, %s1287_s21   ;;  %p1083_p0 = pnand %p1031_p12, %p1405_p11 }
 0x324   : > { %s935_s13 = scalar_lea.sflag [#allocation5], %s934_s20 }
 0x325   : > { %p1084_p1 = pneg %p1083_p0 }
 0x327   : > { %1282 = dma.done.wait (%p1084_p1), %s935_s13, 1024  }
 0x328   : > { %1284 = vsyncadd (%p1084_p1), %s935_s13, 4294966272  ;;  %s25_s26 = sadd.s32 1, %s1307_s26   ;;  %s1581_s28 = sld [smem:[#allocation13_spill]] }
 0x329   : > { %p22_p2 = scmp.ge.s32.totalorder %s25_s26, 4   ;;  %s1582_s10 = sld [smem:[#allocation12_spill]] }
 0x32a   : > { %s1583_s21 = smov %s1291_s22  ;;  %s1584_s22 = smov %s1295_s23 }
 0x32b   : > { %s1586_s24 = smov %s1303_s25  ;;  %24 = sbr.rel (!%p22_p2) target bundleno = 10 (0xa), region = 106 }
 0x32e   : > { %s1585_s23 = smov %s1581_s28 }
 0x32f   : > { %s1587_s25 = smov %s1582_s10 }
 0x330   :  { %941 = vsyncpa [#allocation4], 1 }
 0x331   :  { %943 = vsyncpa [#allocation4 + $0x1], 1 }
 0x332   :  { %944 = vsyncpa [#allocation7], 1 }
 0x333   :  { %946 = vsyncpa [#allocation7 + $0x1], 1 }
 0x334   :  { %947 = vsyncpa [#allocation5], 1 }
 0x335   :  { %949 = vsyncpa [#allocation5 + $0x1], 1 }

</bundles_post_ra>
